<compile_context>
chip_gen: v7x
topology: tpu7x:2x2x1
jax: 0.10.0
libtpu: 0.0.40
codegen_flags: <defaults>
</compile_context>

<pallas_src>
import functools

import jax
import jax.numpy as jnp
from jax.experimental import pallas as pl
from jax.experimental.pallas import tpu as pltpu


def _mlp_kernel(x_ref, w1_ref, b1_ref, w2_ref, b2_ref, out_ref):
    # x:  (TILE_B, 11)        w1: (11, 1024)     b1: (1, 1024)
    # w2: (1, 1024) row       b2: (1, 1)         out: (TILE_B, 1)
    x = x_ref[...]
    # Layer 1 on the MXU, f32 accumulation.
    h = jnp.dot(x, w1_ref[...], preferred_element_type=jnp.float32) + b1_ref[...]
    h = jnp.maximum(h, 0.0)  # ReLU on the VPU
    # Layer 2: N=1 matmul -> VPU broadcast-multiply + XLU cross-lane reduce.
    y = jnp.sum(h * w2_ref[...], axis=-1, keepdims=True) + b2_ref[...]
    out_ref[...] = y.astype(out_ref.dtype)


@functools.partial(jax.jit, static_argnames=("tile_b", "use_bf16_inputs"))
def breast_cancer_classifier(x, w1, b1, w2, b2, *, tile_b=256,
                             use_bf16_inputs=False):
    """Forward pass: relu(x @ w1 + b1) @ w2 + b2.

    x:  (B, 11) float32
    w1: (11, 1000), b1: (1, 1000)
    w2: (1000, 1),  b2: (1, 1)
    returns (B, 1) float32
    """
    B, K = x.shape
    H = w1.shape[1]

    # --- Pad hidden dim to a multiple of 128 (1000 -> 1024), zero-filled. ---
    H_pad = ((H + 127) // 128) * 128
    if H_pad != H:
        w1 = jnp.pad(w1, ((0, 0), (0, H_pad - H)))
        b1 = jnp.pad(b1, ((0, 0), (0, H_pad - H)))
        w2 = jnp.pad(w2, ((0, H_pad - H), (0, 0)))
    # w2 as a lane-dense row (1, H_pad) for the VPU/XLU second layer.
    w2_row = w2.reshape(1, H_pad)

    # Optional bf16 cast for the MXU layer (bandwidth win on v6e/v7x); the
    # accumulate stays f32 via preferred_element_type.
    if use_bf16_inputs:
        x = x.astype(jnp.bfloat16)
        w1 = w1.astype(jnp.bfloat16)

    # --- Pick a batch tile: multiple of 8 sublanes, don't over-pad tiny B. ---
    tile_b = max(8, ((min(tile_b, ((B + 7) // 8) * 8) + 7) // 8) * 8)
    B_pad = ((B + tile_b - 1) // tile_b) * tile_b
    if B_pad != B:
        x = jnp.pad(x, ((0, B_pad - B), (0, 0)))

    grid = (pl.cdiv(B_pad, tile_b),)

    out = pl.pallas_call(
        _mlp_kernel,
        out_shape=jax.ShapeDtypeStruct((B_pad, 1), jnp.float32),
        grid=grid,
        in_specs=[
            # x: tiled over the batch grid.
            pl.BlockSpec((tile_b, K), lambda i: (i, 0)),
            # Weights/biases: constant index_map -> DMA'd once, VMEM-resident.
            pl.BlockSpec((K, H_pad), lambda i: (0, 0)),
            pl.BlockSpec((1, H_pad), lambda i: (0, 0)),
            pl.BlockSpec((1, H_pad), lambda i: (0, 0)),
            pl.BlockSpec((1, 1), lambda i: (0, 0)),
        ],
        out_specs=pl.BlockSpec((tile_b, 1), lambda i: (i, 0)),
        compiler_params=pltpu.CompilerParams(
            dimension_semantics=("parallel",),  # megacore sharding on v7x
        ),
    )(x, w1, b1, w2_row, b2)

    return out[:B]  # drop batch padding


def init_params(key):
    """Deterministic synthetic params matching nn.Linear(11,1000)/nn.Linear(1000,1)."""
    k1, k2, k3, k4 = jax.random.split(key, 4)
    lim1 = 1.0 / jnp.sqrt(11.0)
    lim2 = 1.0 / jnp.sqrt(1000.0)
    w1 = jax.random.uniform(k1, (11, 1000), jnp.float32, -lim1, lim1)
    b1 = jax.random.uniform(k2, (1, 1000), jnp.float32, -lim1, lim1)
    w2 = jax.random.uniform(k3, (1000, 1), jnp.float32, -lim2, lim2)
    b2 = jax.random.uniform(k4, (1, 1), jnp.float32, -lim2, lim2)
    return w1, b1, w2, b2


def _reference(x, w1, b1, w2, b2):
    return jnp.maximum(x @ w1 + b1, 0.0) @ w2 + b2


if __name__ == "__main__":
    key = jax.random.PRNGKey(0)
    kx, kp = jax.random.split(key)
    w1, b1, w2, b2 = init_params(kp)

    # Small batch: exercises batch padding (10 -> 16) on a single tile.
    x_small = jax.random.normal(kx, (10, 11), jnp.float32)
    out_small = jax.block_until_ready(
        breast_cancer_classifier(x_small, w1, b1, w2, b2))
    ref_small = _reference(x_small, w1, b1, w2, b2)
    assert out_small.shape == (10, 1)
    assert jnp.allclose(out_small, ref_small, atol=1e-4, rtol=1e-4)

    # Multi-tile batch: forces grid=(3,) with tile_b=8 plus last-tile padding.
    x_big = jax.random.normal(kx, (20, 11), jnp.float32)
    out_big = jax.block_until_ready(
        breast_cancer_classifier(x_big, w1, b1, w2, b2, tile_b=8))
    ref_big = _reference(x_big, w1, b1, w2, b2)
    assert out_big.shape == (20, 1)
    assert jnp.allclose(out_big, ref_big, atol=1e-4, rtol=1e-4)

    print("KERNEL_OK")
</pallas_src>

<mosaic_0001>
module attributes {stable_mosaic.version = 11 : i64} {
  func.func @_mlp_kernel(%arg0: i32, %arg1: memref<16x11xf32, #tpu.memory_space<vmem>>, %arg2: memref<11x1024xf32, #tpu.memory_space<vmem>>, %arg3: memref<1x1024xf32, #tpu.memory_space<vmem>>, %arg4: memref<1x1024xf32, #tpu.memory_space<vmem>>, %arg5: memref<1x1xf32, #tpu.memory_space<vmem>>, %arg6: memref<16x1xf32, #tpu.memory_space<vmem>>) attributes {dimension_semantics = [#tpu.dimension_semantics<parallel>], iteration_bounds = array<i64: 1>, scalar_prefetch = 0 : i64, scratch_operands = 0 : i64, tpu.core_type = #tpu.core_type<tc>, window_params = [{transform_indices = @transform_0, window_bounds = array<i64: 16, 11>}, {pipeline_mode = #tpu.pipeline_mode<synchronous>, transform_indices = @transform_1, window_bounds = array<i64: 11, 1024>}, {pipeline_mode = #tpu.pipeline_mode<synchronous>, transform_indices = @transform_2, window_bounds = array<i64: 1, 1024>}, {pipeline_mode = #tpu.pipeline_mode<synchronous>, transform_indices = @transform_3, window_bounds = array<i64: 1, 1024>}, {pipeline_mode = #tpu.pipeline_mode<synchronous>, transform_indices = @transform_4, window_bounds = array<i64: 1, 1>}, {transform_indices = @transform_5, window_bounds = array<i64: 16, 1>}]} {
    %c0 = arith.constant 0 : index
    %c0_0 = arith.constant 0 : index
    %0 = vector.load %arg1[%c0, %c0_0] : memref<16x11xf32, #tpu.memory_space<vmem>>, vector<16x11xf32>
    %c0_1 = arith.constant 0 : index
    %c0_2 = arith.constant 0 : index
    %1 = vector.load %arg2[%c0_1, %c0_2] : memref<11x1024xf32, #tpu.memory_space<vmem>>, vector<11x1024xf32>
    %cst = arith.constant dense<0.000000e+00> : vector<16x1024xf32>
    %2 = tpu.matmul %0, %1, %cst {dimension_numbers = #tpu.dot_dimension_numbers<[1], [0], [0], [1], [0, 0, 1, 1], [], []>} : vector<16x11xf32>, vector<11x1024xf32>, vector<16x1024xf32> -> vector<16x1024xf32>
    %c0_3 = arith.constant 0 : index
    %c0_4 = arith.constant 0 : index
    %3 = vector.load %arg3[%c0_3, %c0_4] : memref<1x1024xf32, #tpu.memory_space<vmem>>, vector<1x1024xf32>
    %4 = vector.broadcast %3 : vector<1x1024xf32> to vector<16x1024xf32>
    %5 = arith.addf %2, %4 : vector<16x1024xf32>
    %cst_5 = arith.constant 0.000000e+00 : f32
    %6 = vector.broadcast %cst_5 : f32 to vector<16x1024xf32>
    %7 = arith.maximumf %5, %6 : vector<16x1024xf32>
    %c0_6 = arith.constant 0 : index
    %c0_7 = arith.constant 0 : index
    %8 = vector.load %arg4[%c0_6, %c0_7] : memref<1x1024xf32, #tpu.memory_space<vmem>>, vector<1x1024xf32>
    %9 = vector.broadcast %8 : vector<1x1024xf32> to vector<16x1024xf32>
    %10 = arith.mulf %7, %9 : vector<16x1024xf32>
    %cst_8 = arith.constant dense<0.000000e+00> : vector<16xf32>
    %11 = vector.multi_reduction <add>, %10, %cst_8 [1] : vector<16x1024xf32> to vector<16xf32>
    %12 = vector.shape_cast %11 : vector<16xf32> to vector<16x1xf32>
    %c0_9 = arith.constant 0 : index
    %c0_10 = arith.constant 0 : index
    %13 = vector.load %arg5[%c0_9, %c0_10] : memref<1x1xf32, #tpu.memory_space<vmem>>, vector<1x1xf32>
    %14 = vector.broadcast %13 : vector<1x1xf32> to vector<16x1xf32>
    %15 = arith.addf %12, %14 : vector<16x1xf32>
    %c0_11 = arith.constant 0 : index
    %c0_12 = arith.constant 0 : index
    %16 = vector.load %arg6[%c0_11, %c0_12] : memref<16x1xf32, #tpu.memory_space<vmem>>, vector<16x1xf32>
    tpu.vector_store %arg6[%c0_11, %c0_12], %15 {strides = array<i32>} : memref<16x1xf32, #tpu.memory_space<vmem>>, vector<16x1xf32>,
    return
  }
  func.func @transform_0(%arg0: i32) -> (i32, i32) {
    %c0_i32 = arith.constant 0 : i32
    %c0_i32_0 = arith.constant 0 : i32
    return %arg0, %c0_i32 : i32, i32
  }
  func.func @transform_1(%arg0: i32) -> (i32, i32) {
    %c0_i32 = arith.constant 0 : i32
    %c0_i32_0 = arith.constant 0 : i32
    %c0_i32_1 = arith.constant 0 : i32
    return %c0_i32, %c0_i32_0 : i32, i32
  }
  func.func @transform_2(%arg0: i32) -> (i32, i32) {
    %c0_i32 = arith.constant 0 : i32
    %c0_i32_0 = arith.constant 0 : i32
    %c0_i32_1 = arith.constant 0 : i32
    return %c0_i32, %c0_i32_0 : i32, i32
  }
  func.func @transform_3(%arg0: i32) -> (i32, i32) {
    %c0_i32 = arith.constant 0 : i32
    %c0_i32_0 = arith.constant 0 : i32
    %c0_i32_1 = arith.constant 0 : i32
    return %c0_i32, %c0_i32_0 : i32, i32
  }
  func.func @transform_4(%arg0: i32) -> (i32, i32) {
    %c0_i32 = arith.constant 0 : i32
    %c0_i32_0 = arith.constant 0 : i32
    %c0_i32_1 = arith.constant 0 : i32
    return %c0_i32, %c0_i32_0 : i32, i32
  }
  func.func @transform_5(%arg0: i32) -> (i32, i32) {
    %c0_i32 = arith.constant 0 : i32
    %c0_i32_0 = arith.constant 0 : i32
    return %arg0, %c0_i32 : i32, i32
  }
}

</mosaic_0001>

<bundles_post_ra>
// kernel: breast_cancer_classifier.1
= control target key start
LH: loop header
LB: loop body
LE: loop exit
PB: predicated region body
PF: predicated region fallthrough
CT: control target
= control target key end

     0   :  { %vm89_vm0 = vcmask 1042432   ;;  %vm573_vm1 = vmmov 1   ;;  %v574_v3 = vmov 0.0   ;;  %vm82_vm3 = vcmask 89088   ;;  %s722_s1 = inlined_call_operand.vmem [shape: f32[11,1024], index: 1, kind: input, shape index: {}]   ;;  %s723_s0 = inlined_call_operand.vmem [shape: f32[16,11], index: 0, kind: input, shape index: {}]   ;;  %s724_s4 = inlined_call_operand.<no memory space> [shape: f32[1,1], index: 4, kind: input, shape index: {}]   ;;  %s725_s2 = inlined_call_operand.vmem [shape: f32[1,1024], index: 2, kind: input, shape index: {}]   ;;  %s726_s3 = inlined_call_operand.vmem [shape: f32[1,1024], index: 3, kind: input, shape index: {}]   ;;  %s727_s5 = inlined_call_operand.vmem [shape: f32[16,1], index: 5, kind: output, shape index: {}]  }
   0x1   :  { %v25_v0 = vld [vmem:[%s722_s1 + $0x8] sm:$0xff]  ;;  %vm611_vm2 = vmpackc.low %vm89_vm0, %vm573_vm1  ;;  %178 = vmatprep.mubr.f32.mxu0 %v574_v3  ;;  %255 = vmatprep.mubr.f32.mxu1 %v574_v3  ;;  %v24_v5 = vld [vmem:[%s722_s1] sm:$0xff]  ;;  %v10_v28 = vstv %s724_s4  ;;  %v42_v29 = vlaneseq  ;;  %vm523_vm4 = vcmask 7168  }
   0x2   :  { %v33_v1 = vld [vmem:[%s722_s1 + $0x48] sm:$0x7]  ;;  %v32_v6 = vld [vmem:[%s722_s1 + $0x40] sm:$0x7]  ;;  %v27_v7 = vld [vmem:[%s722_s1 + $0x18] sm:$0xff] }
   0x3   :  { %v547_v4 = vpack.c.bf16 %v33_v1, %v25_v0  ;;  %v550_v8 = vpack.c.bf16 %v32_v6, %v24_v5  ;;  %v35_v9 = vld [vmem:[%s722_s1 + $0x58] sm:$0x7]  ;;  %v26_v10 = vld [vmem:[%s722_s1 + $0x10] sm:$0xff]  ;;  %v29_v13 = vld [vmem:[%s722_s1 + $0x28] sm:$0xff]  ;;  %11 = vst [vmem:[#allocation2] sm:$0x1] %v10_v28 }
   0x4   :  { %v553_v11 = vpack.c.bf16 %v35_v9, %v27_v7  ;;  %v34_v12 = vld [vmem:[%s722_s1 + $0x50] sm:$0x7]  ;;  %v37_v14 = vld [vmem:[%s722_s1 + $0x68] sm:$0x7]  ;;  %v22_v15 = vld [vmem:[%s723_s0] sm:$0xff]  ;;  %v690_v30 = vshrl.u32 %v42_v29, 7 }
   0x5   :  { %549 = vmatprep.subr.msk.bf16.mxu0 %vm611_vm2, %v547_v4  ;;  %v556_v16 = vpack.c.bf16 %v34_v12, %v26_v10  ;;  %v559_v17 = vpack.c.bf16 %v37_v14, %v29_v13  ;;  %v28_v18 = vld [vmem:[%s722_s1 + $0x20] sm:$0xff]  ;;  %v31_v21 = vld [vmem:[%s722_s1 + $0x38] sm:$0xff]  ;;  %v30_v23 = vld [vmem:[%s722_s1 + $0x30] sm:$0xff] }
   0x6   :  { %552 = vmatpush1.bf16.msk.msra.mxu0 %vm611_vm2, %v550_v8  ;;  %v36_v19 = vld [vmem:[%s722_s1 + $0x60] sm:$0x7]  ;;  %555 = vmatprep.subr.msk.bf16.mxu1 %vm611_vm2, %v553_v11  ;;  %v39_v22 = vld [vmem:[%s722_s1 + $0x78] sm:$0x7]  ;;  %v38_v25 = vld [vmem:[%s722_s1 + $0x70] sm:$0x7] }
   0x7   :  { %v562_v20 = vpack.c.bf16 %v36_v19, %v28_v18  ;;  %558 = vmatpush1.bf16.msk.msra.mxu1 %vm611_vm2, %v556_v16  ;;  %561 = vmatprep.subr.msk.bf16.mxu0 %vm611_vm2, %v559_v17  ;;  %v565_v24 = vpack.c.bf16 %v39_v22, %v31_v21  ;;  %v568_v26 = vpack.c.bf16 %v38_v25, %v30_v23  ;;  %v23_v27 = vld [vmem:[%s723_s0 + $0x8] sm:$0xff]  ;;  %v44_v31 = vsub.s32 0, %v690_v30  ;;  %v40_v32 = vld [vmem:[%s725_s2] sm:$0xff] }
   0x8   :  { %v48_v33 = vsub.s32 1, %v690_v30  ;;  %v52_v34 = vsub.s32 2, %v690_v30  ;;  %v56_v35 = vsub.s32 3, %v690_v30  ;;  %v702_v37 = vld [vmem:[%s726_s3] sm:$0xff]  ;;  %v60_v42 = vsub.s32 4, %v690_v30 }
   0x9   :  { %532 = vmatmul.mubr.msk.f32.vlgmr.msra.gmra.mrb[0].mxu0 %vm82_vm3, %v22_v15  ;;  %567 = vmatprep.subr.msk.bf16.mxu1 %vm611_vm2, %v565_v24  ;;  %v45_v36 = vrot.slane %v40_v32, %v44_v31  ;;  %v64_v43 = vsub.s32 5, %v690_v30  ;;  %v443_v45 = vrot.slane %v702_v37, %v44_v31  ;;  %v68_v51 = vsub.s32 6, %v690_v30 }
   0xa   :  { %564 = vmatpush1.bf16.msk.msra.mxu0 %vm611_vm2, %v562_v20  ;;  %184 = vmatprep.mubr.f32.mxu0 %v574_v3  ;;  %v49_v38 = vrot.slane %v40_v32, %v48_v33  ;;  %v53_v39 = vrot.slane %v40_v32, %v52_v34  ;;  %v57_v41 = vrot.slane %v40_v32, %v56_v35  ;;  %v72_v56 = vsub.s32 7, %v690_v30 }
   0xb   :  { %536 = vmatmul.mubr.msk.f32.vlgmr.msra.gmra.mrb[0].mxu1 %vm82_vm3, %v22_v15  ;;  %v447_v48 = vrot.slane %v702_v37, %v48_v33  ;;  %v451_v50 = vrot.slane %v702_v37, %v52_v34  ;;  %v455_v55 = vrot.slane %v702_v37, %v56_v35  ;;  %v61_v60 = vrot.slane %v40_v32, %v60_v42 }
   0xc   :  { %570 = vmatpush1.bf16.msk.msra.mxu1 %vm611_vm2, %v568_v26  ;;  %261 = vmatprep.mubr.f32.mxu1 %v574_v3  ;;  %v65_v61 = vrot.slane %v40_v32, %v64_v43  ;;  %v459_v2 = vrot.slane %v702_v37, %v60_v42  ;;  %v69_v7 = vrot.slane %v40_v32, %v68_v51 }
   0xd   :  { %533 = vmatmul.mubr.msk.f32.gmra.mrb[2].mxu0 %vm82_vm3, %v23_v27  ;;  %v73_v12 = vrot.slane %v40_v32, %v72_v56  ;;  %v463_v22 = vrot.slane %v702_v37, %v64_v43  ;;  %v467_v31 = vrot.slane %v702_v37, %v68_v51 }
   0xe   :  { %332 = vmatprep.mubr.f32.mxu0 %v574_v3 }
   0xf   :  { %537 = vmatmul.mubr.msk.f32.gmra.mrb[2].mxu1 %vm82_vm3, %v23_v27 }
  0x10   :  { %409 = vmatprep.mubr.f32.mxu1 %v574_v3 }
  0x11   :  { %540 = vmatmul.mubr.msk.f32.vlgmr.msra.gmra.mrb[4].mxu0 %vm82_vm3, %v22_v15 }
  0x12   :  { %338 = vmatprep.mubr.f32.mxu0 %v574_v3 }
  0x13   :  { %544 = vmatmul.mubr.msk.f32.vlgmr.msra.gmra.mrb[4].mxu1 %vm82_vm3, %v22_v15 }
  0x14   :  { %415 = vmatprep.mubr.f32.mxu1 %v574_v3 }
  0x15   :  { %541 = vmatmul.mubr.msk.f32.gmra.mrb[6].mxu0 %vm82_vm3, %v23_v27 }
  0x17   :  { %545 = vmatmul.mubr.msk.f32.gmra.mrb[6].mxu1 %vm82_vm3, %v23_v27 }
  0xdc   :  { %v180_v40 = vpop.f32.mrb[0].mxu0 }
  0xdd   :  { %v181_v44 = vadd.f32 %v180_v40, %v45_v36  ;;  %v182_v46 = vpop.f32.mrb[1].mxu0 }
  0xde   :  { %v183_v47 = vadd.f32 %v182_v46, %v49_v38  ;;  %v257_v49 = vpop.f32.mrb[0].mxu1 }
  0xdf   :  { %v422_v52 = vmax.f32 %v181_v44, 0.0  ;;  %v258_v53 = vadd.f32 %v257_v49, %v53_v39  ;;  %v259_v54 = vpop.f32.mrb[1].mxu1 }
  0xe0   :  { %v423_v57 = vmax.f32 %v183_v47, 0.0  ;;  %v186_v58 = vpop.f32.mrb[2].mxu0  ;;  %v260_v59 = vadd.f32 %v259_v54, %v57_v41 }
  0xe1   :  { %v480_v62 = vmul.f32 %v443_v45, %v422_v52  ;;  %v424_v63 = vmax.f32 %v258_v53, 0.0  ;;  %v187_v0 = vadd.f32 %v186_v58, %v45_v36  ;;  %v188_v1 = vpop.f32.mrb[3].mxu0 }
  0xe2   :  { %v481_v3 = vmul.f32 %v447_v48, %v423_v57  ;;  %v189_v4 = vadd.f32 %v188_v1, %v49_v38  ;;  %v425_v5 = vmax.f32 %v260_v59, 0.0  ;;  %v263_v6 = vpop.f32.mrb[2].mxu1 }
  0xe3   :  { %v482_v8 = vmul.f32 %v451_v50, %v424_v63  ;;  %v430_v9 = vmax.f32 %v187_v0, 0.0  ;;  %v264_v10 = vadd.f32 %v263_v6, %v53_v39  ;;  %v265_v11 = vpop.f32.mrb[3].mxu1 }
  0xe4   :  { %v496_v13 = vadd.f32 %v481_v3, %v480_v62  ;;  %v431_v14 = vmax.f32 %v189_v4, 0.0  ;;  %v483_v15 = vmul.f32 %v455_v55, %v425_v5  ;;  %v334_v16 = vpop.f32.mrb[4].mxu0  ;;  %v266_v17 = vadd.f32 %v265_v11, %v57_v41 }
  0xe5   :  { %v488_v18 = vmul.f32 %v443_v45, %v430_v9  ;;  %v432_v19 = vmax.f32 %v264_v10, 0.0  ;;  %v335_v20 = vadd.f32 %v334_v16, %v61_v60  ;;  %v336_v21 = vpop.f32.mrb[5].mxu0  ;;  %v546_v9 = vld [vmem:[#allocation2] ss:$0 sm:$0xff] }
  0xe6   :  { %v497_v23 = vadd.f32 %v496_v13, %v482_v8  ;;  %v489_v24 = vmul.f32 %v447_v48, %v431_v14  ;;  %v433_v25 = vmax.f32 %v266_v17, 0.0  ;;  %v337_v26 = vadd.f32 %v336_v21, %v65_v61  ;;  %v411_v27 = vpop.f32.mrb[4].mxu1 }
  0xe7   :  { %v490_v28 = vmul.f32 %v451_v50, %v432_v19  ;;  %v426_v29 = vmax.f32 %v335_v20, 0.0  ;;  %v412_v30 = vadd.f32 %v411_v27, %v69_v7  ;;  %v413_v32 = vpop.f32.mrb[5].mxu1  ;;  %v471_v48 = vrot.slane %v702_v37, %v72_v56 }
  0xe8   :  { %v505_v33 = vadd.f32 %v489_v24, %v488_v18  ;;  %v498_v34 = vadd.f32 %v497_v23, %v483_v15  ;;  %v491_v35 = vmul.f32 %v455_v55, %v433_v25  ;;  %v427_v36 = vmax.f32 %v337_v26, 0.0  ;;  %v340_v38 = vpop.f32.mrb[6].mxu0 }
  0xe9   :  { %v484_v39 = vmul.f32 %v459_v2, %v426_v29  ;;  %v341_v40 = vadd.f32 %v340_v38, %v61_v60  ;;  %v428_v41 = vmax.f32 %v412_v30, 0.0  ;;  %v342_v42 = vpop.f32.mrb[7].mxu0  ;;  %v414_v43 = vadd.f32 %v413_v32, %v73_v12 }
  0xea   :  { %v506_v44 = vadd.f32 %v505_v33, %v490_v28  ;;  %v485_v45 = vmul.f32 %v463_v22, %v427_v36  ;;  %v343_v46 = vadd.f32 %v342_v42, %v65_v61  ;;  %v417_v47 = vpop.f32.mrb[6].mxu1 }
  0xeb   :  { %v499_v49 = vadd.f32 %v498_v34, %v484_v39  ;;  %v434_v50 = vmax.f32 %v341_v40, 0.0  ;;  %v486_v51 = vmul.f32 %v467_v31, %v428_v41  ;;  %v429_v52 = vmax.f32 %v414_v43, 0.0  ;;  %v419_v53 = vpop.f32.mrb[7].mxu1 }
  0xec   :  { %v507_v54 = vadd.f32 %v506_v44, %v491_v35  ;;  %v435_v55 = vmax.f32 %v343_v46, 0.0  ;;  %v418_v57 = vadd.f32 %v417_v47, %v69_v7  ;;  %v420_v58 = vadd.f32 %v419_v53, %v73_v12 }
  0xed   :  { %v492_v59 = vmul.f32 %v459_v2, %v434_v50  ;;  %v500_v60 = vadd.f32 %v499_v49, %v485_v45  ;;  %v487_v3 = vmul.f32 %v471_v48, %v429_v52 }
  0xee   :  { %v493_v62 = vmul.f32 %v463_v22, %v435_v55  ;;  %v436_v63 = vmax.f32 %v418_v57, 0.0  ;;  %v437_v1 = vmax.f32 %v420_v58, 0.0 }
  0xef   :  { %v508_v0 = vadd.f32 %v507_v54, %v492_v59  ;;  %v501_v61 = vadd.f32 %v500_v60, %v486_v51 }
  0xf0   :  { %v494_v4 = vmul.f32 %v467_v31, %v436_v63  ;;  %v495_v56 = vmul.f32 %v471_v48, %v437_v1 }
  0xf1   :  { %v509_v5 = vadd.f32 %v508_v0, %v493_v62  ;;  %v502_v37 = vadd.f32 %v501_v61, %v487_v3 }
  0xf3   :  { %503 = vadd.xlane.f32.xlu0 %v502_v37  ;;  %v510_v6 = vadd.f32 %v509_v5, %v494_v4 }
  0xf5   :  { %v511_v8 = vadd.f32 %v510_v6, %v495_v56 }
  0xf7   :  { %512 = vadd.xlane.f32.xlu0 %v511_v8 }
 0x180   :  { %v504_v7 = vpop.xlane.xlu0 %503 }
 0x181   :  { %v521_v10 = vadd.f32 %v546_v9, %v504_v7 }
 0x183   :  { %524 = vst.msk [vmem:[%s727_s5] sm:$0xff] %vm523_vm4, %v521_v10 }
 0x184   :  { %v513_v2 = vpop.xlane.xlu0 %512 }
 0x185   :  { %v522_v11 = vadd.f32 %v546_v9, %v513_v2 }
 0x187   :  { %525 = vst.msk [vmem:[%s727_s5 + $0x8] sm:$0xff] %vm523_vm4, %v522_v11 }

</bundles_post_ra>
